<compile_context>
chip_gen: v6e
topology: v6e:2x2x1
jax: 0.10.0
libtpu: 0.0.40
codegen_flags: <defaults>
</compile_context>

<pallas_src>
import functools
import math

import jax
import jax.numpy as jnp
from jax.experimental import pallas as pl
from jax.experimental.pallas import tpu as pltpu

_MIB = 1024 * 1024


# ----------------------------------------------------------------------------
# helpers
# ----------------------------------------------------------------------------
def _round_up(x, m):
    return ((x + m - 1) // m) * m


def _sublane_align(dtype):
    # f32 tiles are 8 rows deep; bf16/f16 pack two rows per sublane -> 16.
    return 8 if jnp.dtype(dtype).itemsize >= 4 else 16


def _largest_divisor_tile(dim, preferred, align):
    """Largest multiple of `align` that divides `dim` and is <= `preferred`,
    or `dim` itself if dim <= preferred / no divisor exists."""
    if dim <= preferred:
        return dim
    t = (preferred // align) * align
    while t >= align:
        if dim % t == 0:
            return t
        t -= align
    return dim


def _vmem_limit(nbytes):
    # Headroom above the actual tile footprint, but never above ~48 MiB so the
    # same configuration also fits within v7x's 64 MiB/TC physical VMEM.
    return int(min(max(nbytes * 5 // 4 + 4 * _MIB, 32 * _MIB), 48 * _MIB))


def _choose_seq_tiling(seq_len, sub, seq_tile=256):
    """Returns (S_pad, tile) with tile | S_pad, minimizing padded rows."""
    if seq_len <= seq_tile:
        t = _round_up(seq_len, sub)
        return t, t
    s_pad = _round_up(seq_len, sub)
    t = _largest_divisor_tile(s_pad, seq_tile, sub)
    if t == s_pad or t < 64:
        # No usable divisor: fall back to full tiles + in-kernel KV mask.
        t = seq_tile
        s_pad = _round_up(seq_len, seq_tile)
    return s_pad, t


# ----------------------------------------------------------------------------
# Tiled projection (x @ W) with f32 accumulator
# ----------------------------------------------------------------------------
def _matmul_kernel(x_ref, w_ref, o_ref, acc_ref):
    @pl.when(pl.program_id(2) == 0)
    def _init():
        acc_ref[...] = jnp.zeros_like(acc_ref)

    acc_ref[...] += jnp.dot(
        x_ref[...], w_ref[...], preferred_element_type=jnp.float32
    )

    @pl.when(pl.program_id(2) == pl.num_programs(2) - 1)
    def _done():
        o_ref[...] = acc_ref[...].astype(o_ref.dtype)


def _projection(x, w, *, tm_pref=512, tn_pref=512, tk_pref=1024):
    """x: (M, K) @ w: (K, N) -> (M, N).

    M must already be sublane-aligned (the wrapper pads the sequence once);
    N and K should be multiples of 128 (true for transformer hidden sizes).
    """
    M, K = x.shape
    Kw, N = w.shape
    assert K == Kw, (K, Kw)
    sub = _sublane_align(x.dtype)
    assert M % sub == 0, f"token count {M} must be a multiple of {sub}"

    tm = _largest_divisor_tile(M, tm_pref, sub)
    tn = _largest_divisor_tile(N, tn_pref, 128)
    tk = _largest_divisor_tile(K, tk_pref, 128)
    if tn > 4096 or tk > 4096:
        raise ValueError(
            f"projection dims (N={N}, K={K}) must be multiples of 128 "
            "or small enough to be used as a single tile")

    grid = (M // tm, N // tn, K // tk)
    itemsize = jnp.dtype(x.dtype).itemsize
    vmem_bytes = 2 * (tm * tk + tk * tn + tm * tn) * itemsize + tm * tn * 4
    cost = pl.CostEstimate(
        flops=2 * M * N * K,
        transcendentals=0,
        bytes_accessed=(M * K * (N // tn) + K * N + M * N) * itemsize,
    )

    return pl.pallas_call(
        _matmul_kernel,
        out_shape=jax.ShapeDtypeStruct((M, N), x.dtype),
        grid_spec=pltpu.PrefetchScalarGridSpec(
            num_scalar_prefetch=0,
            grid=grid,
            in_specs=[
                pl.BlockSpec((tm, tk), lambda i, j, k: (i, k)),
                pl.BlockSpec((tk, tn), lambda i, j, k: (k, j)),
            ],
            out_specs=pl.BlockSpec((tm, tn), lambda i, j, k: (i, j)),
            scratch_shapes=[pltpu.VMEM((tm, tn), jnp.float32)],
        ),
        compiler_params=pltpu.CompilerParams(
            dimension_semantics=("parallel", "parallel", "arbitrary"),
            vmem_limit_bytes=_vmem_limit(vmem_bytes),
        ),
        cost_estimate=cost,
    )(x, w)


# ----------------------------------------------------------------------------
# GQA flash attention: all heads per grid step, online softmax over KV tiles
# ----------------------------------------------------------------------------
def _flash_kernel(q_ref, kv_ref, o_ref, m_sc, l_sc, acc_sc, *,
                  num_heads, num_kv_heads, head_dim, kv_len, kv_tile,
                  needs_mask):
    ki = pl.program_id(2)

    @pl.when(ki == 0)
    def _init():
        m_sc[...] = jnp.full_like(m_sc, -jnp.inf)
        l_sc[...] = jnp.zeros_like(l_sc)
        acc_sc[...] = jnp.zeros_like(acc_sc)

    group = num_heads // num_kv_heads
    d = head_dim
    kv_dim = num_kv_heads * d

    q = q_ref[...]        # (tq, NH*D)   -- softmax scale pre-folded into Wq
    kv = kv_ref[...]      # (tkv, 2*NKV*D), columns = [K heads | V heads]

    if needs_mask:
        # Padding only affects the last kv tile; build a cheap (1, tkv) row
        # bias instead of a full (tq, tkv) mask on every step.
        pos = ki * kv_tile + jax.lax.broadcasted_iota(
            jnp.int32, (1, kv.shape[0]), 1)
        bias = jnp.where(pos < kv_len, 0.0, -1e30).astype(jnp.float32)

    # Unrolled per-head loop: the single KV block in VMEM is reused by every
    # query head (full GQA KV reuse).
    for h in range(num_heads):
        g = h // group
        q_h = q[:, h * d:(h + 1) * d]                          # (tq, D)
        k_h = kv[:, g * d:(g + 1) * d]                         # (tkv, D)
        v_h = kv[:, kv_dim + g * d:kv_dim + (g + 1) * d]       # (tkv, D)

        s = jax.lax.dot_general(
            q_h, k_h, (((1,), (1,)), ((), ())),
            preferred_element_type=jnp.float32)                # (tq, tkv)
        if needs_mask:
            s = s + bias

        m_prev = m_sc[:, h:h + 1]
        m_new = jnp.maximum(m_prev, s.max(axis=-1, keepdims=True))
        alpha = jnp.exp(m_prev - m_new)
        p = jnp.exp(s - m_new)
        l_sc[:, h:h + 1] = alpha * l_sc[:, h:h + 1] + p.sum(
            axis=-1, keepdims=True)
        acc_sc[:, h * d:(h + 1) * d] = (
            alpha * acc_sc[:, h * d:(h + 1) * d]
            + jnp.dot(p.astype(v_h.dtype), v_h,
                      preferred_element_type=jnp.float32))
        m_sc[:, h:h + 1] = m_new

    @pl.when(ki == pl.num_programs(2) - 1)
    def _done():
        inv_l = pl.reciprocal(l_sc[...], approx=True)          # EUP, (tq, NH)
        outs = [acc_sc[:, h * d:(h + 1) * d] * inv_l[:, h:h + 1]
                for h in range(num_heads)]
        # Single lane-dense (tq, NH*D) store in token-major layout.
        o_ref[...] = jnp.concatenate(outs, axis=-1).astype(o_ref.dtype)


def _flash_attention(q, kv, *, num_heads, num_kv_heads, head_dim,
                     kv_len, kv_tile, needs_mask):
    """q: (B, S_pad, NH*D), kv: (B, S_pad, 2*NKV*D) -> (B, S_pad, NH*D)."""
    B, S_pad, H = q.shape
    kv_width = kv.shape[-1]
    t = kv_tile
    n_t = S_pad // t
    grid = (B, n_t, n_t)

    kernel = functools.partial(
        _flash_kernel,
        num_heads=num_heads, num_kv_heads=num_kv_heads, head_dim=head_dim,
        kv_len=kv_len, kv_tile=t, needs_mask=needs_mask)

    itemsize = jnp.dtype(q.dtype).itemsize
    vmem_bytes = (2 * (t * H + t * kv_width + t * H) * itemsize
                  + (t * H + 2 * t * num_heads) * 4)
    cost = pl.CostEstimate(
        flops=4 * B * num_heads * S_pad * S_pad * head_dim,
        transcendentals=B * num_heads * S_pad * S_pad,
        bytes_accessed=(2 * B * S_pad * H + n_t * B * S_pad * kv_width)
        * itemsize,
    )

    return pl.pallas_call(
        kernel,
        out_shape=jax.ShapeDtypeStruct((B, S_pad, H), q.dtype),
        grid_spec=pltpu.PrefetchScalarGridSpec(
            num_scalar_prefetch=0,
            grid=grid,
            in_specs=[
                pl.BlockSpec((None, t, H), lambda b, qi, ki: (b, qi, 0)),
                pl.BlockSpec((None, t, kv_width), lambda b, qi, ki: (b, ki, 0)),
            ],
            out_specs=pl.BlockSpec((None, t, H), lambda b, qi, ki: (b, qi, 0)),
            scratch_shapes=[
                pltpu.VMEM((t, num_heads), jnp.float32),   # running max
                pltpu.VMEM((t, num_heads), jnp.float32),   # running denom
                pltpu.VMEM((t, H), jnp.float32),           # output accumulator
            ],
        ),
        compiler_params=pltpu.CompilerParams(
            dimension_semantics=("parallel", "parallel", "arbitrary"),
            vmem_limit_bytes=_vmem_limit(vmem_bytes),
        ),
        cost_estimate=cost,
    )(q, kv)


# ----------------------------------------------------------------------------
# One-time weight preparation (weight-load time, NOT per forward call)
# ----------------------------------------------------------------------------
def prepare_sapnous_attention_weights(wq_t, wk_t, wv_t, wo_t, *, num_heads):
    """Weights in (in_features, out_features) layout (transpose of nn.Linear).

    Folds the 1/sqrt(head_dim) softmax scale into Wq and fuses Wk|Wv into one
    lane-dense KV projection weight.  Call once at load time.
    """
    head_dim = wq_t.shape[1] // num_heads
    wq_scaled = wq_t * (1.0 / math.sqrt(head_dim))
    w_kv = jnp.concatenate([wk_t, wv_t], axis=1)
    return wq_scaled, w_kv, wo_t


# ----------------------------------------------------------------------------
# Full attention module forward
# ----------------------------------------------------------------------------
def sapnous_t1_attention(hidden_states, wq_scaled, w_kv, wo_t, *,
                         num_heads, num_kv_heads, seq_tile=256):
    """hidden_states: (B, S, hidden).  Weights from prepare_sapnous_attention_weights."""
    B, S, Hin = hidden_states.shape
    H = wq_scaled.shape[1]
    head_dim = H // num_heads
    kv_width = w_kv.shape[1]                       # 2 * num_kv_heads * head_dim
    sub = _sublane_align(hidden_states.dtype)

    S_pad, t = _choose_seq_tiling(S, sub, seq_tile)
    if S_pad != S:
        hidden_states = jnp.pad(
            hidden_states, ((0, 0), (0, S_pad - S), (0, 0)))
    needs_mask = S_pad != S

    x2d = hidden_states.reshape(B * S_pad, Hin)    # free reshape

    q = _projection(x2d, wq_scaled)                # (B*S_pad, NH*D)
    kv = _projection(x2d, w_kv)                    # (B*S_pad, 2*NKV*D)

    # Only free leading-dim reshapes between stages -- no HBM transposes.
    q3 = q.reshape(B, S_pad, H)
    kv3 = kv.reshape(B, S_pad, kv_width)

    attn = _flash_attention(
        q3, kv3, num_heads=num_heads, num_kv_heads=num_kv_heads,
        head_dim=head_dim, kv_len=S, kv_tile=t, needs_mask=needs_mask)

    out = _projection(attn.reshape(B * S_pad, H), wo_t)   # (B*S_pad, hidden)
    out = out.reshape(B, S_pad, -1)
    return out[:, :S] if S_pad != S else out


# ----------------------------------------------------------------------------
# Pure-JAX reference (matches the PyTorch forward, mask=None, no dropout)
# ----------------------------------------------------------------------------
def _reference_attention(x, wq_t, wk_t, wv_t, wo_t, num_heads, num_kv_heads):
    B, S, H = x.shape
    D = H // num_heads
    q = (x @ wq_t).reshape(B, S, num_heads, D).transpose(0, 2, 1, 3)
    k = (x @ wk_t).reshape(B, S, num_kv_heads, D).transpose(0, 2, 1, 3)
    v = (x @ wv_t).reshape(B, S, num_kv_heads, D).transpose(0, 2, 1, 3)
    rep = num_heads // num_kv_heads
    k = jnp.repeat(k, rep, axis=1)
    v = jnp.repeat(v, rep, axis=1)
    s = jnp.einsum("bhqd,bhkd->bhqk", q, k) / math.sqrt(D)
    p = jax.nn.softmax(s.astype(jnp.float32), axis=-1).astype(x.dtype)
    o = jnp.einsum("bhqk,bhkd->bhqd", p, v)
    o = o.transpose(0, 2, 1, 3).reshape(B, S, H)
    return o @ wo_t


if __name__ == "__main__":
    # Small config consistent with the module: hidden=128, 4 q heads, 2 kv heads.
    batch, seq, hidden = 2, 8, 128
    num_heads, num_kv_heads = 4, 2
    head_dim = hidden // num_heads
    kv_dim = num_kv_heads * head_dim

    key = jax.random.PRNGKey(0)
    kx, kq, kk, kv_, ko = jax.random.split(key, 5)

    x = jax.random.normal(kx, (batch, seq, hidden), dtype=jnp.float32)

    # torch.nn.Linear weights are (out, in); we store the (in, out) transpose.
    sc = 1.0 / math.sqrt(hidden)
    wq_t = jax.random.uniform(kq, (hidden, hidden), jnp.float32, -sc, sc)
    wk_t = jax.random.uniform(kk, (hidden, kv_dim), jnp.float32, -sc, sc)
    wv_t = jax.random.uniform(kv_, (hidden, kv_dim), jnp.float32, -sc, sc)
    wo_t = jax.random.uniform(ko, (hidden, hidden), jnp.float32, -sc, sc)

    # One-time weight prep (load time): scale folded into Wq, Wk|Wv fused.
    wq_s, w_kv, wo_p = prepare_sapnous_attention_weights(
        wq_t, wk_t, wv_t, wo_t, num_heads=num_heads)

    out = sapnous_t1_attention(
        x, wq_s, w_kv, wo_p,
        num_heads=num_heads, num_kv_heads=num_kv_heads,
    )
    out = jax.block_until_ready(out)

    ref = _reference_attention(x, wq_t, wk_t, wv_t, wo_t, num_heads, num_kv_heads)
    assert out.shape == (batch, seq, hidden)
    max_err = float(jnp.max(jnp.abs(out - ref)))
    assert jnp.allclose(out, ref, atol=2e-3, rtol=2e-3), max_err

    print("KERNEL_OK")
</pallas_src>

<mosaic_0001>
module attributes {stable_mosaic.version = 11 : i64} {
  func.func @_matmul_kernel(%arg0: i32, %arg1: i32, %arg2: i32, %arg3: memref<16x128xf32, #tpu.memory_space<vmem>>, %arg4: memref<128x128xf32, #tpu.memory_space<vmem>>, %arg5: memref<16x128xf32, #tpu.memory_space<vmem>>, %arg6: memref<16x128xf32, #tpu.memory_space<vmem>>) attributes {dimension_semantics = [#tpu.dimension_semantics<parallel>, #tpu.dimension_semantics<parallel>, #tpu.dimension_semantics<arbitrary>], iteration_bounds = array<i64: 1, 1, 1>, scalar_prefetch = 0 : i64, scratch_operands = 1 : i64, tpu.core_type = #tpu.core_type<tc>, window_params = [{transform_indices = @transform_0, window_bounds = array<i64: 16, 128>}, {transform_indices = @transform_1, window_bounds = array<i64: 128, 128>}, {transform_indices = @transform_2, window_bounds = array<i64: 16, 128>}]} {
    %c0_i32 = arith.constant 0 : i32
    %0 = arith.cmpi eq, %arg2, %c0_i32 : i32
    %1 = arith.extui %0 : i1 to i32
    %c0_i32_0 = arith.constant 0 : i32
    %2 = arith.cmpi ne, %1, %c0_i32_0 : i32
    scf.if %2 {
      %cst_10 = arith.constant 0.000000e+00 : f32
      %12 = vector.broadcast %cst_10 : f32 to vector<16x128xf32>
      %c0_11 = arith.constant 0 : index
      %c0_12 = arith.constant 0 : index
      %13 = vector.load %arg6[%c0_11, %c0_12] : memref<16x128xf32, #tpu.memory_space<vmem>>, vector<16x128xf32>
      tpu.vector_store %arg6[%c0_11, %c0_12], %12 {strides = array<i32>} : memref<16x128xf32, #tpu.memory_space<vmem>>, vector<16x128xf32>,
    } else {
    }
    %c0 = arith.constant 0 : index
    %c0_1 = arith.constant 0 : index
    %3 = vector.load %arg6[%c0, %c0_1] : memref<16x128xf32, #tpu.memory_space<vmem>>, vector<16x128xf32>
    %c0_2 = arith.constant 0 : index
    %c0_3 = arith.constant 0 : index
    %4 = vector.load %arg3[%c0_2, %c0_3] : memref<16x128xf32, #tpu.memory_space<vmem>>, vector<16x128xf32>
    %c0_4 = arith.constant 0 : index
    %c0_5 = arith.constant 0 : index
    %5 = vector.load %arg4[%c0_4, %c0_5] : memref<128x128xf32, #tpu.memory_space<vmem>>, vector<128x128xf32>
    %cst = arith.constant dense<0.000000e+00> : vector<16x128xf32>
    %6 = tpu.matmul %4, %5, %cst {dimension_numbers = #tpu.dot_dimension_numbers<[1], [0], [0], [1], [0, 0, 1, 1], [], []>} : vector<16x128xf32>, vector<128x128xf32>, vector<16x128xf32> -> vector<16x128xf32>
    %7 = arith.addf %3, %6 : vector<16x128xf32>
    %c0_6 = arith.constant 0 : index
    %c0_7 = arith.constant 0 : index
    %8 = vector.load %arg6[%c0_6, %c0_7] : memref<16x128xf32, #tpu.memory_space<vmem>>, vector<16x128xf32>
    tpu.vector_store %arg6[%c0_6, %c0_7], %7 {strides = array<i32>} : memref<16x128xf32, #tpu.memory_space<vmem>>, vector<16x128xf32>,
    %c0_i32_8 = arith.constant 0 : i32
    %9 = arith.cmpi eq, %arg2, %c0_i32_8 : i32
    %10 = arith.extui %9 : i1 to i32
    %c0_i32_9 = arith.constant 0 : i32
    %11 = arith.cmpi ne, %10, %c0_i32_9 : i32
    scf.if %11 {
      %c0_10 = arith.constant 0 : index
      %c0_11 = arith.constant 0 : index
      %12 = vector.load %arg6[%c0_10, %c0_11] : memref<16x128xf32, #tpu.memory_space<vmem>>, vector<16x128xf32>
      %c0_12 = arith.constant 0 : index
      %c0_13 = arith.constant 0 : index
      %13 = vector.load %arg5[%c0_12, %c0_13] : memref<16x128xf32, #tpu.memory_space<vmem>>, vector<16x128xf32>
      tpu.vector_store %arg5[%c0_12, %c0_13], %12 {strides = array<i32>} : memref<16x128xf32, #tpu.memory_space<vmem>>, vector<16x128xf32>,
    } else {
    }
    return
  }
  func.func @transform_0(%arg0: i32, %arg1: i32, %arg2: i32) -> (i32, i32) {
    %c0_i32 = arith.constant 0 : i32
    return %arg0, %arg2 : i32, i32
  }
  func.func @transform_1(%arg0: i32, %arg1: i32, %arg2: i32) -> (i32, i32) {
    %c0_i32 = arith.constant 0 : i32
    return %arg2, %arg1 : i32, i32
  }
  func.func @transform_2(%arg0: i32, %arg1: i32, %arg2: i32) -> (i32, i32) {
    %c0_i32 = arith.constant 0 : i32
    return %arg0, %arg1 : i32, i32
  }
}

</mosaic_0001>

<bundles_post_ra>
// kernel: tpu_custom_call.1
= control target key start
LH: loop header
LB: loop body
LE: loop exit
PB: predicated region body
PF: predicated region fallthrough
CT: control target
= control target key end

     0   :  { %7 = vsyncpa [#allocation4], 0  ;;  %s332_s0 = inlined_call_operand.hbm [shape: f32[16,128], index: 0, kind: input, shape index: {}]   ;;  %s333_s1 = inlined_call_operand.hbm [shape: f32[128,128], index: 1, kind: input, shape index: {}]   ;;  %s334_s2 = inlined_call_operand.hbm [shape: f32[16,128], index: 2, kind: output, shape index: {}]  }
   0x1   :  { %8 = vsyncpa [#allocation7], 0 }
   0x2   :  { %9 = vsyncpa [#allocation5], 0  ;;  %s294_s9 = smov [#allocation3]  }
   0x3   :  { %s15_s10 = sshll.u32 %s294_s9, 4  ;;  %s16_s10 = int_to_ptr.vmem [resolvable:$true] %s15_s10 }
   0x4   :  { %s236_s11 = scalar_lea.vmem %s16_s10, 256  ;;  %p241_p1 = scmp.lt.s32.totalorder %s16_s10, %s16_s10 }
   0x5   :  { %p237_p0 = scmp.ne.s32.totalorder %s16_s10, %s236_s11  ;;  %p242_p2 = scmp.lt.s32.totalorder %s236_s11, %s236_s11 }
   0x7   :  { %p243_p3 = por %p242_p2, %p241_p1 }
   0x9   :  { %p244_p4 = pnand %p243_p3, %p237_p0 }
   0xb   :  { %247 = shalt.err (!%p244_p4)
}
   0xc   :  { %s295_s12 = smov 128   ;;  %s296_s13 = smov 8  }
   0xd   :  { %21 = dma.hbm_to_vmem [thread:$0]  %s332_s0, 256, %s16_s10, [#allocation4], %s295_s12, %s295_s12, %s296_s13  }
   0xe   :  { %s297_s16 = smov [#allocation6]  }
   0xf   :  { %s27_s17 = sshll.u32 %s297_s16, 4  ;;  %s28_s17 = int_to_ptr.vmem [resolvable:$true] %s27_s17 }
  0x10   :  { %s256_s18 = scalar_lea.vmem %s28_s17, 2048  ;;  %p261_p6 = scmp.lt.s32.totalorder %s28_s17, %s28_s17 }
  0x11   :  { %p257_p5 = scmp.ne.s32.totalorder %s28_s17, %s256_s18  ;;  %p262_p7 = scmp.lt.s32.totalorder %s256_s18, %s256_s18 }
  0x13   :  { %p263_p8 = por %p262_p7, %p261_p6 }
  0x15   :  { %p264_p9 = pnand %p263_p8, %p257_p5 }
  0x17   :  { %267 = shalt.err (!%p264_p9)
}
  0x18   :  { %33 = dma.hbm_to_vmem [thread:$0]  %s333_s1, 2048, %s28_s17, [#allocation7], %s295_s12, %s295_s12, %s296_s13  }
  0x19   :  { %288 = dma.done.wait [#allocation4], 256  }
  0x1a   :  { %289 = vsyncadd [#allocation4], 4294967040 }
  0x1b   :  { %290 = dma.done.wait [#allocation7], 2048  }
  0x1c   :  { %291 = vsyncadd [#allocation7], 4294965248  ;;  %v65_v0 = vld [vmem:[#allocation6 + $0x78] sm:$0xff]  ;;  %v64_v1 = vld [vmem:[#allocation6 + $0x70] sm:$0xff]  ;;  %s298_s0 = smov [#allocation8]  }
  0x1d   :  { %188 = vmatprep.subr.mxu0 %v65_v0  ;;  %v63_v2 = vld [vmem:[#allocation6 + $0x68] sm:$0xff]  ;;  %v62_v3 = vld [vmem:[#allocation6 + $0x60] sm:$0xff]  ;;  %v48_v4 = vld [vmem:[#allocation3] sm:$0xff]  ;;  %s157_s1 = sshll.u32 %s298_s0, 4  ;;  %s158_s1 = int_to_ptr.vmem [resolvable:$true] %s157_s1 }
  0x1e   :  { %189 = vmatpush3.msra.mxu0 %v65_v0  ;;  %v61_v5 = vld [vmem:[#allocation6 + $0x58] sm:$0xff]  ;;  %220 = vmatprep.mubr.f32.mxu0 %v48_v4  ;;  %v60_v6 = vld [vmem:[#allocation6 + $0x50] sm:$0xff]  ;;  %v59_v7 = vld [vmem:[#allocation6 + $0x48] sm:$0xff]  ;;  %s268_s21 = scalar_lea.vmem %s158_s1, 256  ;;  %p273_p11 = scmp.lt.s32.totalorder %s158_s1, %s158_s1 }
  0x1f   :  { %190 = vmatprep.subr.mxu0 %v64_v1  ;;  %v58_v8 = vld [vmem:[#allocation6 + $0x40] sm:$0xff]  ;;  %v57_v9 = vld [vmem:[#allocation6 + $0x38] sm:$0xff]  ;;  %v56_v10 = vld [vmem:[#allocation6 + $0x30] sm:$0xff]  ;;  %p269_p10 = scmp.ne.s32.totalorder %s158_s1, %s268_s21  ;;  %p274_p12 = scmp.lt.s32.totalorder %s268_s21, %s268_s21 }
  0x20   :  { %191 = vmatpush3.msra.mxu0 %v64_v1  ;;  %v55_v11 = vld [vmem:[#allocation6 + $0x28] sm:$0xff]  ;;  %v54_v12 = vld [vmem:[#allocation6 + $0x20] sm:$0xff]  ;;  %v53_v13 = vld [vmem:[#allocation6 + $0x18] sm:$0xff] }
  0x21   :  { %192 = vmatprep.subr.mxu0 %v63_v2  ;;  %v52_v14 = vld [vmem:[#allocation6 + $0x10] sm:$0xff]  ;;  %v51_v15 = vld [vmem:[#allocation6 + $0x8] sm:$0xff]  ;;  %v50_v16 = vld [vmem:[#allocation6] sm:$0xff]  ;;  %p275_p13 = por %p274_p12, %p273_p11 }
  0x22   :  { %193 = vmatpush3.msra.mxu0 %v63_v2  ;;  %v49_v17 = vld [vmem:[#allocation3 + $0x8] sm:$0xff] }
  0x23   :  { %194 = vmatprep.subr.mxu0 %v62_v3  ;;  %p276_p0 = pnand %p275_p13, %p269_p10 }
  0x24   :  { %195 = vmatpush3.msra.mxu0 %v62_v3 }
  0x25   :  { %196 = vmatprep.subr.mxu0 %v61_v5 }
  0x26   :  { %197 = vmatpush3.msra.mxu0 %v61_v5 }
  0x27   :  { %198 = vmatprep.subr.mxu0 %v60_v6 }
  0x28   :  { %199 = vmatpush3.msra.mxu0 %v60_v6 }
  0x29   :  { %200 = vmatprep.subr.mxu0 %v59_v7 }
  0x2a   :  { %201 = vmatpush3.msra.mxu0 %v59_v7 }
  0x2b   :  { %202 = vmatprep.subr.mxu0 %v58_v8 }
  0x2c   :  { %203 = vmatpush3.msra.mxu0 %v58_v8 }
  0x2d   :  { %204 = vmatprep.subr.mxu0 %v57_v9 }
  0x2e   :  { %205 = vmatpush3.msra.mxu0 %v57_v9 }
  0x2f   :  { %206 = vmatprep.subr.mxu0 %v56_v10 }
  0x30   :  { %207 = vmatpush3.msra.mxu0 %v56_v10 }
  0x31   :  { %208 = vmatprep.subr.mxu0 %v55_v11 }
  0x32   :  { %209 = vmatpush3.msra.mxu0 %v55_v11 }
  0x33   :  { %210 = vmatprep.subr.mxu0 %v54_v12 }
  0x34   :  { %211 = vmatpush3.msra.mxu0 %v54_v12 }
  0x35   :  { %212 = vmatprep.subr.mxu0 %v53_v13 }
  0x36   :  { %213 = vmatpush3.msra.mxu0 %v53_v13 }
  0x37   :  { %214 = vmatprep.subr.mxu0 %v52_v14 }
  0x38   :  { %215 = vmatpush3.msra.mxu0 %v52_v14 }
  0x39   :  { %216 = vmatprep.subr.mxu0 %v51_v15 }
  0x3a   :  { %217 = vmatpush3.msra.mxu0 %v51_v15 }
  0x3b   :  { %218 = vmatprep.subr.mxu0 %v50_v16 }
  0x3c   :  { %219 = vmatpush3.msra.mxu0 %v50_v16 }
  0x3d   :  { %221 = vmatmul.mubr.f32.vlgmr.msra.gmra.mxu0 %v49_v17 }
  0xfd   :  { %v222_v18 = vpop.f32.mrf.mxu0 }
  0xfe   :  { %151 = vst [vmem:[#allocation8 + $0x8] sm:$0xff] %v222_v18 }
  0xff   :  { %v132_v19 = vpop.f32.mrf.mxu0 }
 0x100   :  { %150 = vst [vmem:[#allocation8] sm:$0xff] %v132_v19 }
 0x101   :  { %279 = shalt.err (!%p276_p0)
}
 0x102   :  { %163 = dma.vmem_to_hbm [thread:$0]  %s158_s1, 256, %s334_s2, [#allocation5], %s295_s12, %s295_s12, %s296_s13  }
 0x103   :  { %292 = dma.done.wait [#allocation5], 256  }
 0x104   :  { %293 = vsyncadd [#allocation5], 4294967040 }
 0x105   :  { %167 = vsyncpa [#allocation4], 1 }
 0x106   :  { %168 = vsyncpa [#allocation7], 1 }
 0x107   :  { %169 = vsyncpa [#allocation5], 1 }

</bundles_post_ra>
